<compile_context>
chip_gen: v7x
topology: tpu7x:2x2x1
jax: 0.10.0
libtpu: 0.0.40
codegen_flags: <defaults>
</compile_context>

<pallas_src>
import jax
import jax.numpy as jnp
from jax.experimental import pallas as pl
from jax.experimental.pallas import tpu as pltpu


def _span_selector_kernel(h_ref, w_ref, b_ref, lab_ref, ce_ref, ij_ref):
    h = h_ref[...]                     # (TB, S, H)  bf16 (or caller dtype)
    w = w_ref[...]                     # (K, H)      same dtype as h (resident)
    bias = b_ref[...]                  # (1, K, 1)   f32
    labels = lab_ref[...]              # (TB, K, 1)  i32  (label_i, label_j)

    TB, S, H = h.shape
    K = w.shape[0]

    # Lane-dense projection on the MXU (f32 accumulation):
    #   logits[b, k, s] = sum_h w[k, h] * h[b, s, h] + bias[k]
    wb = jnp.broadcast_to(w[None], (TB, K, H))
    logits = jnp.einsum('bkh,bsh->bks', wb, h,
                        preferred_element_type=jnp.float32) + bias   # (TB,K,S) f32

    iota_s = jax.lax.broadcasted_iota(jnp.int32, logits.shape, 2)    # (TB, K, S)

    # --- cross entropy over the seq (lane) axis, per (b, k) -------------------
    m = jnp.max(logits, axis=2, keepdims=True)                       # (TB, K, 1)
    lse = m + jnp.log(jnp.sum(jnp.exp(logits - m), axis=2, keepdims=True))
    onehot = iota_s == labels                                        # (TB, K, S)
    picked = jnp.sum(jnp.where(onehot, logits, 0.0), axis=2, keepdims=True)
    ce_ref[...] = lse - picked                                       # (TB, K, 1)

    # --- argmax over seq (first max index, matching torch.max) ---------------
    is_max = logits == m
    ij_ref[...] = jnp.min(jnp.where(is_max, iota_s, S), axis=2, keepdims=True)


def span_selector_forward(hidden, fc_w, fc_b, label_i, label_j, *, block_b=None):
    """hidden: [B,S,H] (bf16 or f32 BERT encoder output), fc_w: [K,H], fc_b: [K],
    label_i/label_j: [B] int32. Returns (loss, (accuracy, 0., 0.), (i, j))."""
    B, S, H = hidden.shape
    K = fc_w.shape[0]  # num_labels == 2 (start, end)

    # Pick a batch tile so the double-buffered (TB, S, H) hidden block stays
    # well under the default scoped-VMEM limits (also safe on v7x's 64 MiB).
    if block_b is None:
        bytes_per_row = S * H * hidden.dtype.itemsize
        max_tb = max(1, (4 * 1024 * 1024) // bytes_per_row)   # <= ~4 MiB / block
        block_b = B
        while block_b > max_tb or B % block_b:
            block_b -= 1
    TB = block_b
    grid = (B // TB,)

    w = fc_w.astype(hidden.dtype)                              # (K, H) resident
    bias = fc_b.astype(jnp.float32).reshape(1, K, 1)
    labels = jnp.stack([label_i, label_j], axis=-1).astype(jnp.int32).reshape(B, K, 1)

    itemsize = hidden.dtype.itemsize
    cost = pl.CostEstimate(
        flops=2 * B * S * H * K,
        transcendentals=B * K * S,
        bytes_accessed=B * S * H * itemsize + K * H * itemsize + B * K * 12,
    )

    ce, ij = pl.pallas_call(
        _span_selector_kernel,
        out_shape=(
            jax.ShapeDtypeStruct((B, K, 1), jnp.float32),   # per-sample CE
            jax.ShapeDtypeStruct((B, K, 1), jnp.int32),     # per-sample argmax
        ),
        grid_spec=pltpu.PrefetchScalarGridSpec(
            num_scalar_prefetch=0,
            grid=grid,
            in_specs=[
                pl.BlockSpec((TB, S, H), lambda b: (b, 0, 0)),   # hidden tile
                pl.BlockSpec((K, H), lambda b: (0, 0)),          # resident weight
                pl.BlockSpec((1, K, 1), lambda b: (0, 0, 0)),    # resident bias
                pl.BlockSpec((TB, K, 1), lambda b: (b, 0, 0)),   # labels
            ],
            out_specs=[
                pl.BlockSpec((TB, K, 1), lambda b: (b, 0, 0)),
                pl.BlockSpec((TB, K, 1), lambda b: (b, 0, 0)),
            ],
        ),
        compiler_params=pltpu.CompilerParams(
            dimension_semantics=("parallel",)),
        cost_estimate=cost,
    )(hidden, w, bias, labels)

    # Tiny reductions in the wrapper (keeps the grid axis fully parallel):
    # mean over (B, K) CE entries == (ce_start + ce_end) / 2 with mean reduction.
    loss = jnp.mean(ce)
    i = ij[:, 0, 0]
    j = ij[:, 1, 0]
    acc = jnp.sum(((i == label_i) & (j == label_j)).astype(jnp.int32))
    return (loss,
            (acc, jnp.zeros((1,), jnp.float32), jnp.zeros((1,), jnp.float32)),
            (i, j))


if __name__ == "__main__":
    B, S, H, K = 2, 8, 32, 2  # batch, seq, hidden, num_labels

    key = jax.random.PRNGKey(0)
    k_h, k_w, k_b, k_li, k_lj = jax.random.split(key, 5)

    # Stand-in for the BERT encoder output (see TODO above); kept in bf16 as
    # a real encoder would produce.
    hidden = jax.random.normal(k_h, (B, S, H), dtype=jnp.float32).astype(jnp.bfloat16)

    # Deterministic fc parameters: nn.Linear(hidden_size, num_labels)
    fc_w = jax.random.normal(k_w, (K, H), dtype=jnp.float32) * 0.05
    fc_b = jax.random.normal(k_b, (K,), dtype=jnp.float32) * 0.05

    label_i = jax.random.randint(k_li, (B,), 0, S, dtype=jnp.int32)
    label_j = jax.random.randint(k_lj, (B,), 0, S, dtype=jnp.int32)

    loss, (acc, z0, z1), (i_pred, j_pred) = span_selector_forward(
        hidden, fc_w, fc_b, label_i, label_j)
    jax.block_until_ready((loss, acc, i_pred, j_pred))

    # Pure-JAX reference check (same bf16-cast inputs, f32 math afterwards).
    h32 = hidden.astype(jnp.float32)
    w32 = fc_w.astype(jnp.bfloat16).astype(jnp.float32)
    logits_ref = jnp.einsum('bsh,kh->bsk', h32, w32) + fc_b
    start_ref, end_ref = logits_ref[..., 0], logits_ref[..., 1]

    def ce_fn(lg, lab):
        lse = jax.scipy.special.logsumexp(lg, axis=1)
        return jnp.mean(lse - lg[jnp.arange(B), lab])

    loss_ref = (ce_fn(start_ref, label_i) + ce_fn(end_ref, label_j)) / 2.0
    i_ref = jnp.argmax(start_ref, axis=1)
    j_ref = jnp.argmax(end_ref, axis=1)
    acc_ref = jnp.sum((i_ref == label_i) & (j_ref == label_j))

    assert jnp.allclose(loss, loss_ref, atol=1e-3), (loss, loss_ref)
    assert jnp.array_equal(i_pred, i_ref.astype(jnp.int32))
    assert jnp.array_equal(j_pred, j_ref.astype(jnp.int32))
    assert int(acc) == int(acc_ref)

    print("KERNEL_OK")
</pallas_src>

<mosaic_0001>
module attributes {stable_mosaic.version = 11 : i64} {
  func.func @_span_selector_kernel(%arg0: i32, %arg1: memref<2x8x32xbf16, #tpu.memory_space<vmem>>, %arg2: memref<2x32xbf16, #tpu.memory_space<vmem>>, %arg3: memref<1x2x1xf32, #tpu.memory_space<vmem>>, %arg4: memref<2x2x1xi32, #tpu.memory_space<vmem>>, %arg5: memref<2x2x1xf32, #tpu.memory_space<vmem>>, %arg6: memref<2x2x1xi32, #tpu.memory_space<vmem>>) attributes {dimension_semantics = [#tpu.dimension_semantics<parallel>], iteration_bounds = array<i64: 1>, scalar_prefetch = 0 : i64, scratch_operands = 0 : i64, tpu.core_type = #tpu.core_type<tc>, window_params = [{transform_indices = @transform_0, window_bounds = array<i64: 2, 8, 32>}, {pipeline_mode = #tpu.pipeline_mode<synchronous>, transform_indices = @transform_1, window_bounds = array<i64: 2, 32>}, {pipeline_mode = #tpu.pipeline_mode<synchronous>, transform_indices = @transform_2, window_bounds = array<i64: 1, 2, 1>}, {transform_indices = @transform_3, window_bounds = array<i64: 2, 2, 1>}, {transform_indices = @transform_4, window_bounds = array<i64: 2, 2, 1>}, {transform_indices = @transform_5, window_bounds = array<i64: 2, 2, 1>}]} {
    %c0 = arith.constant 0 : index
    %c0_0 = arith.constant 0 : index
    %c0_1 = arith.constant 0 : index
    %0 = vector.load %arg1[%c0, %c0_0, %c0_1] : memref<2x8x32xbf16, #tpu.memory_space<vmem>>, vector<2x8x32xbf16>
    %c0_2 = arith.constant 0 : index
    %c0_3 = arith.constant 0 : index
    %1 = vector.load %arg2[%c0_2, %c0_3] : memref<2x32xbf16, #tpu.memory_space<vmem>>, vector<2x32xbf16>
    %c0_4 = arith.constant 0 : index
    %c0_5 = arith.constant 0 : index
    %c0_6 = arith.constant 0 : index
    %2 = vector.load %arg3[%c0_4, %c0_5, %c0_6] : memref<1x2x1xf32, #tpu.memory_space<vmem>>, vector<1x2x1xf32>
    %c0_7 = arith.constant 0 : index
    %c0_8 = arith.constant 0 : index
    %c0_9 = arith.constant 0 : index
    %3 = vector.load %arg4[%c0_7, %c0_8, %c0_9] : memref<2x2x1xi32, #tpu.memory_space<vmem>>, vector<2x2x1xi32>
    %4 = vector.shape_cast %1 : vector<2x32xbf16> to vector<1x2x32xbf16>
    %5 = vector.shape_cast %4 : vector<1x2x32xbf16> to vector<1x2x32xbf16>
    %6 = vector.broadcast %5 : vector<1x2x32xbf16> to vector<2x2x32xbf16>
    "tpu.trace_start"() <{level = 10 : i32, message = "bkh,bsh->bks"}> : () -> ()
    %cst = arith.constant dense<0.000000e+00> : vector<2x2x8xf32>
    %7 = tpu.matmul %6, %0, %cst {dimension_numbers = #tpu.dot_dimension_numbers<[2], [2], [1], [1], [0, 0, 0, 1, 1, 1], [0], [0]>} : vector<2x2x32xbf16>, vector<2x8x32xbf16>, vector<2x2x8xf32> -> vector<2x2x8xf32>
    "tpu.trace_stop"() : () -> ()
    %8 = vector.broadcast %2 : vector<1x2x1xf32> to vector<2x2x8xf32>
    %9 = arith.addf %7, %8 : vector<2x2x8xf32>
    %10 = tpu.iota {dimensions = array<i32: 2>} : vector<2x2x8xi32>
    %cst_10 = arith.constant dense<0xFF800000> : vector<2x2xf32>
    %11 = vector.multi_reduction <maximumf>, %9, %cst_10 [2] : vector<2x2x8xf32> to vector<2x2xf32>
    %12 = vector.shape_cast %11 : vector<2x2xf32> to vector<2x2x1xf32>
    %13 = vector.broadcast %12 : vector<2x2x1xf32> to vector<2x2x8xf32>
    %14 = arith.subf %9, %13 : vector<2x2x8xf32>
    %15 = math.exp %14 : vector<2x2x8xf32>
    %cst_11 = arith.constant dense<0.000000e+00> : vector<2x2xf32>
    %16 = vector.multi_reduction <add>, %15, %cst_11 [2] : vector<2x2x8xf32> to vector<2x2xf32>
    %17 = vector.shape_cast %16 : vector<2x2xf32> to vector<2x2x1xf32>
    %18 = math.log %17 : vector<2x2x1xf32>
    %19 = arith.addf %12, %18 : vector<2x2x1xf32>
    %20 = vector.broadcast %3 : vector<2x2x1xi32> to vector<2x2x8xi32>
    %21 = arith.cmpi eq, %10, %20 : vector<2x2x8xi32>
    %cst_12 = arith.constant 0.000000e+00 : f32
    %22 = vector.broadcast %cst_12 : f32 to vector<2x2x8xf32>
    %23 = arith.select %21, %9, %22 : vector<2x2x8xi1>, vector<2x2x8xf32>
    %cst_13 = arith.constant dense<0.000000e+00> : vector<2x2xf32>
    %24 = vector.multi_reduction <add>, %23, %cst_13 [2] : vector<2x2x8xf32> to vector<2x2xf32>
    %25 = vector.shape_cast %24 : vector<2x2xf32> to vector<2x2x1xf32>
    %26 = arith.subf %19, %25 : vector<2x2x1xf32>
    %c0_14 = arith.constant 0 : index
    %c0_15 = arith.constant 0 : index
    %c0_16 = arith.constant 0 : index
    %27 = vector.load %arg5[%c0_14, %c0_15, %c0_16] : memref<2x2x1xf32, #tpu.memory_space<vmem>>, vector<2x2x1xf32>
    tpu.vector_store %arg5[%c0_14, %c0_15, %c0_16], %26 {strides = array<i32>} : memref<2x2x1xf32, #tpu.memory_space<vmem>>, vector<2x2x1xf32>,
    %28 = vector.broadcast %12 : vector<2x2x1xf32> to vector<2x2x8xf32>
    %29 = arith.cmpf oeq, %9, %28 : vector<2x2x8xf32>
    %c8_i32 = arith.constant 8 : i32
    %30 = vector.broadcast %c8_i32 : i32 to vector<2x2x8xi32>
    %31 = arith.select %29, %10, %30 : vector<2x2x8xi1>, vector<2x2x8xi32>
    %cst_17 = arith.constant dense<2147483647> : vector<2x2xi32>
    %32 = vector.multi_reduction <minsi>, %31, %cst_17 [2] : vector<2x2x8xi32> to vector<2x2xi32>
    %33 = vector.shape_cast %32 : vector<2x2xi32> to vector<2x2x1xi32>
    %c0_18 = arith.constant 0 : index
    %c0_19 = arith.constant 0 : index
    %c0_20 = arith.constant 0 : index
    %34 = vector.load %arg6[%c0_18, %c0_19, %c0_20] : memref<2x2x1xi32, #tpu.memory_space<vmem>>, vector<2x2x1xi32>
    tpu.vector_store %arg6[%c0_18, %c0_19, %c0_20], %33 {strides = array<i32>} : memref<2x2x1xi32, #tpu.memory_space<vmem>>, vector<2x2x1xi32>,
    return
  }
  func.func @transform_0(%arg0: i32) -> (i32, i32, i32) {
    %c0_i32 = arith.constant 0 : i32
    %c0_i32_0 = arith.constant 0 : i32
    %c0_i32_1 = arith.constant 0 : i32
    return %arg0, %c0_i32, %c0_i32_0 : i32, i32, i32
  }
  func.func @transform_1(%arg0: i32) -> (i32, i32) {
    %c0_i32 = arith.constant 0 : i32
    %c0_i32_0 = arith.constant 0 : i32
    %c0_i32_1 = arith.constant 0 : i32
    return %c0_i32, %c0_i32_0 : i32, i32
  }
  func.func @transform_2(%arg0: i32) -> (i32, i32, i32) {
    %c0_i32 = arith.constant 0 : i32
    %c0_i32_0 = arith.constant 0 : i32
    %c0_i32_1 = arith.constant 0 : i32
    %c0_i32_2 = arith.constant 0 : i32
    return %c0_i32, %c0_i32_0, %c0_i32_1 : i32, i32, i32
  }
  func.func @transform_3(%arg0: i32) -> (i32, i32, i32) {
    %c0_i32 = arith.constant 0 : i32
    %c0_i32_0 = arith.constant 0 : i32
    %c0_i32_1 = arith.constant 0 : i32
    return %arg0, %c0_i32, %c0_i32_0 : i32, i32, i32
  }
  func.func @transform_4(%arg0: i32) -> (i32, i32, i32) {
    %c0_i32 = arith.constant 0 : i32
    %c0_i32_0 = arith.constant 0 : i32
    %c0_i32_1 = arith.constant 0 : i32
    return %arg0, %c0_i32, %c0_i32_0 : i32, i32, i32
  }
  func.func @transform_5(%arg0: i32) -> (i32, i32, i32) {
    %c0_i32 = arith.constant 0 : i32
    %c0_i32_0 = arith.constant 0 : i32
    %c0_i32_1 = arith.constant 0 : i32
    return %arg0, %c0_i32, %c0_i32_0 : i32, i32, i32
  }
}

</mosaic_0001>

<bundles_post_ra>
// kernel: tpu_custom_call.1
= control target key start
LH: loop header
LB: loop body
LE: loop exit
PB: predicated region body
PF: predicated region fallthrough
CT: control target
= control target key end

     0   :  { %vm31_vm0 = vcmask 261120   ;;  %v244_v0 = vmov 0.0   ;;  %vm245_vm1 = vmmov 0   ;;  %v246_v6 = vmov 0   ;;  %s334_s0 = inlined_call_operand.vmem [shape: bf16[2,8,32], index: 0, kind: input, shape index: {}]   ;;  %s335_s2 = inlined_call_operand.vmem [shape: f32[1,2,1], index: 2, kind: input, shape index: {}]   ;;  %s336_s1 = inlined_call_operand.vmem [shape: bf16[2,32], index: 1, kind: input, shape index: {}]   ;;  %s337_s3 = inlined_call_operand.vmem [shape: s32[2,2,1], index: 3, kind: input, shape index: {}]   ;;  %s338_s4 = inlined_call_operand.vmem [shape: f32[2,2,1], index: 4, kind: output, shape index: {0}]   ;;  %s339_s5 = inlined_call_operand.vmem [shape: s32[2,2,1], index: 5, kind: output, shape index: {1}]  }
   0x1   :  { %219 = vmatprep.subr.bf16.mxu0 %v244_v0  ;;  %225 = vmatprep.subr.bf16.mxu1 %v244_v0  ;;  %v20_v1 = vld [vmem:[%s334_s0] sm:$0xf]  ;;  %v21_v2 = vld [vmem:[%s334_s0 + $0x4] sm:$0xf]  ;;  %vm123_vm2 = vcmask 58368   ;;  %v121_v22 = vlaneseq  ;;  %vm166_vm9 = vcmask 1024  }
   0x2   :  { %v36_v3 = vsel %vm31_vm0, %v20_v1, 0  ;;  %v79_v4 = vsel %vm31_vm0, %v21_v2, 0  ;;  %221 = vmatprep.mubr.msk.bf16.mxu0 %vm245_vm1, %v244_v0  ;;  %227 = vmatprep.mubr.msk.bf16.mxu1 %vm245_vm1, %v244_v0  ;;  %v23_v5 = vld [vmem:[%s335_s2] sm:$0x3]  ;;  %v25_v41 = vld [vmem:[%s337_s3 + $0x2] sm:$0x3] }
   0x3   :  { %220 = vmatpush3.bf16.xpose.msra.mxu0 %v36_v3  ;;  %226 = vmatpush3.bf16.xpose.msra.mxu1 %v79_v4  ;;  %v22_v7 = vld [vmem:[%s336_s1] sm:$0x1]  ;;  %v122_v23 = vand.u32 127, %v121_v22 }
   0x4   :  { %234 = vset.pattern.permute.xlu0 %v246_v6  ;;  %235 = vset.pattern.permute.xlu1 %v246_v6  ;;  %v24_v21 = vld [vmem:[%s337_s3] sm:$0x3] }
   0x5   :  { %28 = vperm.xlu0 %234, %v23_v5  }
   0xa   :  { %222 = vmatmul.mubr.msk.bf16.vlgmr.msra.gmra.mrb[0].mxu0 %vm31_vm0, %v22_v7  ;;  %228 = vmatmul.mubr.msk.bf16.vlgmr.msra.gmra.mrb[0].mxu1 %vm31_vm0, %v22_v7 }
  0x84   :  { %v29_v8 = vpop.permute.xlu0 %28 }
  0xdd   :  { %v72_v9 = vpop.f32.mrb[0].mxu0  ;;  %v115_v10 = vpop.f32.mrb[0].mxu1 }
  0xde   :  { %v73_v11 = vadd.f32 %v72_v9, %v29_v8  ;;  %v293_v12 = vadd.f32 %v115_v10, %v29_v8  ;;  %v223_v13 = vpop.f32.mrb[1].mxu0  ;;  %v229_v14 = vpop.f32.mrb[1].mxu1 }
  0xdf   :  { %v75_v15 = vpop.f32.mrb[2].mxu0  ;;  %v118_v16 = vpop.f32.mrb[2].mxu1 }
  0xe0   :  { %v224_v17 = vpop.f32.mrb[3].mxu0  ;;  %v127_v18 = vsel %vm123_vm2, %v293_v12, -inf  ;;  %v230_v19 = vpop.f32.mrb[3].mxu1  ;;  %v124_v20 = vsel %vm123_vm2, %v73_v11, -inf }
  0xe1   :  { %128 = vmax.xlane.f32.xlu1 %v127_v18  ;;  %125 = vmax.xlane.f32.xlu0 %v124_v20 }
  0xf2   :  { %149 = vperm.xlu1 %235, %v24_v21  }
 0x16e   :  { %v301_v24 = vpop.xlane.xlu1 %128  ;;  %v126_v25 = vpop.xlane.xlu0 %125 }
 0x16f   :  { %v131_v26 = vsub.f32 %v293_v12, %v301_v24  ;;  %vm170_vm3 = vcmp.eq.f32.partialorder %v293_v12, %v301_v24  ;;  %vm169_vm4 = vcmp.eq.f32.partialorder %v73_v11, %v126_v25  ;;  %v130_v42 = vsub.f32 %v73_v11, %v126_v25 }
 0x170   :  { %v171_v27 = vsel %vm169_vm4, %v122_v23, 8  ;;  %v172_v28 = vsel %vm170_vm3, %v122_v23, 8 }
 0x171   :  { %v134_v29 = vmul.f32 1.442695, %v131_v26  ;;  %v173_v30 = vsel %vm123_vm2, %v171_v27, 2147483647  ;;  %v188_v32 = vsel %vm123_vm2, %v172_v28, 2147483647 }
 0x172   :  { %v175_v31 = vshra.s32 %v173_v30, 16  ;;  %v190_v34 = vshra.s32 %v188_v32, 16  ;;  %v150_v36 = vpop.permute.xlu1 %149  ;;  %v132_v43 = vmul.f32 1.442695, %v130_v42  ;;  %v174_v46 = vand.u32 65535, %v173_v30 }
 0x173   :  { %236 = vpow2.f32 %v134_v29  ;;  %vm154_vm5 = vcmp.eq.s32.totalorder %v122_v23, %v150_v36  ;;  %v189_v49 = vand.u32 65535, %v188_v32 }
 0x174   :  { %v177_v33 = vcvt.s32.f32 %v175_v31  ;;  %v192_v35 = vcvt.s32.f32 %v190_v34  ;;  %v156_v39 = vsel %vm154_vm5, %v73_v11, 0.0  ;;  %238 = vpow2.f32 %v132_v43 }
 0x175   :  { %v158_v40 = vsel %vm123_vm2, %v156_v39, 0.0  ;;  %v176_v48 = vcvt.s32.f32 %v174_v46  ;;  %v191_v52 = vcvt.s32.f32 %v189_v49 }
 0x176   :  { %178 = vmin.xlane.f32.xlu1 %v177_v33 }
 0x17a   :  { %193 = vmin.xlane.f32.xlu1 %v192_v35 }
 0x17d   :  { %v237_v37 = vpop.eup %236 }
 0x17e   :  { %v139_v38 = vsel %vm123_vm2, %v237_v37, 0.0  ;;  %v239_v44 = vpop.eup %238 }
 0x17f   :  { %140 = vadd.xlane.f32.xlu0 %v139_v38  ;;  %v136_v45 = vsel %vm123_vm2, %v239_v44, 0.0 }
 0x183   :  { %159 = vadd.xlane.f32.xlu0 %v158_v40 }
 0x18b   :  { %152 = vperm.xlu1 %235, %v25_v41  }
 0x1af   :  { %137 = vadd.xlane.f32.xlu1 %v136_v45 }
 0x203   :  { %v179_v47 = vpop.xlane.xlu1 %178 }
 0x204   :  { %vm180_vm6 = vcmp.eq.f32.partialorder %v177_v33, %v179_v47  ;;  %v185_v0 = vcvt.f32.s32 %v179_v47 }
 0x205   :  { %v181_v50 = vsel %vm180_vm6, %v176_v48, inf }
 0x206   :  { %182 = vmin.xlane.f32.xlu0 %v181_v50  ;;  %v186_v3 = vshll.u32 %v185_v0, 16 }
 0x207   :  { %v194_v51 = vpop.xlane.xlu1 %193 }
 0x208   :  { %vm195_vm7 = vcmp.eq.f32.partialorder %v192_v35, %v194_v51  ;;  %v200_v4 = vcvt.f32.s32 %v194_v51 }
 0x209   :  { %v196_v53 = vsel %vm195_vm7, %v191_v52, inf }
 0x20a   :  { %197 = vmin.xlane.f32.xlu0 %v196_v53  ;;  %v201_v9 = vshll.u32 %v200_v4, 16 }
 0x20b   :  { %v153_v54 = vpop.permute.xlu1 %152 }
 0x20c   :  { %vm155_vm8 = vcmp.eq.s32.totalorder %v122_v23, %v153_v54  ;;  %v141_v58 = vpop.xlane.xlu0 %140 }
 0x20d   :  { %v157_v55 = vsel %vm155_vm8, %v293_v12, 0.0 }
 0x20e   :  { %v161_v56 = vsel %vm123_vm2, %v157_v55, 0.0 }
 0x20f   :  { %162 = vadd.xlane.f32.xlu0 %v161_v56 }
 0x210   :  { %v160_v62 = vpop.xlane.xlu0 %159 }
 0x23c   :  { %v138_v57 = vpop.xlane.xlu1 %137 }
 0x23d   :  { %240 = vlog2.f32 %v138_v57 }
 0x23e   :  { %242 = vlog2.f32 %v141_v58 }
 0x247   :  { %v241_v59 = vpop.eup %240 }
 0x248   :  { %v143_v60 = vmul.f32 0.6931472, %v241_v59  ;;  %v243_v2 = vpop.eup %242 }
 0x249   :  { %v145_v7 = vmul.f32 0.6931472, %v243_v2 }
 0x24a   :  { %v146_v61 = vadd.f32 %v143_v60, %v126_v25 }
 0x24b   :  { %v147_v12 = vadd.f32 %v145_v7, %v301_v24 }
 0x24c   :  { %v164_v63 = vsub.f32 %v146_v61, %v160_v62 }
 0x24e   :  { %167 = vst.msk [vmem:[%s338_s4] sm:$0x3] %vm166_vm9, %v164_v63 }
 0x293   :  { %v183_v1 = vpop.xlane.xlu0 %182 }
 0x294   :  { %v184_v5 = vcvt.f32.s32 %v183_v1 }
 0x296   :  { %v187_v6 = vadd.s32 %v186_v3, %v184_v5 }
 0x297   :  { %v198_v8 = vpop.xlane.xlu0 %197 }
 0x298   :  { %203 = vst.msk [vmem:[%s339_s5] sm:$0x3] %vm166_vm9, %v187_v6  ;;  %v199_v10 = vcvt.f32.s32 %v198_v8 }
 0x29a   :  { %v202_v11 = vadd.s32 %v201_v9, %v199_v10 }
 0x29c   :  { %204 = vst.msk [vmem:[%s339_s5 + $0x2] sm:$0x3] %vm166_vm9, %v202_v11  ;;  %v163_v13 = vpop.xlane.xlu0 %162 }
 0x29d   :  { %v165_v14 = vsub.f32 %v147_v12, %v163_v13 }
 0x29f   :  { %168 = vst.msk [vmem:[%s338_s4 + $0x2] sm:$0x3] %vm166_vm9, %v165_v14 }

</bundles_post_ra>
